<compile_context>
chip_gen: v5e
topology: v5e:2x2
jax: 0.10.0
libtpu: 0.0.40
codegen_flags: <defaults>
</compile_context>

<pallas_src>
import functools

import jax
import jax.numpy as jnp
from jax import lax
from jax.experimental import pallas as pl
from jax.experimental.pallas import tpu as pltpu


NBINS = 64            # histogram bins for the OHEM top-k-sum selection
LOSS_MAX = 16.2       # loss normalisation used inside the monotone bin score
_LOG_CLAMP = -100.0   # torch.nn.BCELoss clamps each log term at -100


# ---------------------------------------------------------------------------
# Kernel 1: fused BCE + OHEM statistics + negative-loss histogram.
#   grid = (B, H-blocks); all reductions accumulate in SMEM outputs that stay
#   resident across the whole (sequential, "arbitrary") grid.
# ---------------------------------------------------------------------------
def _bce_ohem_kernel(pred_ref, gt_ref, mask_ref,
                     posloss_ref, poscnt_ref, maskcnt_ref,
                     histcnt_ref, histsum_ref, *, h_total, th):
    b_idx = pl.program_id(0)
    h_idx = pl.program_id(1)

    @pl.when(jnp.logical_and(b_idx == 0, h_idx == 0))
    def _init():
        posloss_ref[0] = jnp.float32(0.0)
        poscnt_ref[0] = jnp.int32(0)
        maskcnt_ref[0] = jnp.int32(0)

        def _zero(i, carry):
            histcnt_ref[i] = jnp.float32(0.0)
            histsum_ref[i] = jnp.float32(0.0)
            return carry

        lax.fori_loop(0, NBINS, _zero, 0)

    p = pred_ref[0, 0, :, :].astype(jnp.float32)     # channel 0 of pred
    gt = gt_ref[0, :, :].astype(jnp.float32)
    m = mask_ref[0, :, :].astype(jnp.float32)

    if h_total % th != 0:
        # Last H block sticks out past the map: neutralise the garbage rows
        # (only emitted when H is not a multiple of the tile -> zero cost
        # in the common divisible case).
        row = lax.broadcasted_iota(jnp.int32, p.shape, 0) + h_idx * th
        valid = row < h_total
        p = jnp.where(valid, p, 0.5)
        gt = jnp.where(valid, gt, 0.0)
        m = jnp.where(valid, m, 0.0)

    # torch.nn.BCELoss semantics: each log term is clamped at -100 (instead of
    # clipping p), so p == 0 / 1 stays finite and matches the reference.
    log_p = jnp.maximum(jnp.log(p), _LOG_CLAMP)
    log_1mp = jnp.maximum(jnp.log(1.0 - p), _LOG_CLAMP)
    bce = -(gt * log_p + (1.0 - gt) * log_1mp)

    pos = gt * m                  # positive = gt * mask
    neg = (1.0 - gt) * m          # negative = (1 - gt) * mask
    negloss = bce * neg

    # Scalar accumulators: counts kept in int32 so they stay exact past 2^24.
    posloss_ref[0] += jnp.sum(bce * pos)
    poscnt_ref[0] += jnp.sum(pos).astype(jnp.int32)
    maskcnt_ref[0] += jnp.sum(m).astype(jnp.int32)
    # (neg count is derived as mask_cnt - pos_cnt on the host side.)

    # Bin key: 0.5*(p + loss/LOSS_MAX).  For negatives (gt=0, mask=1) both
    # terms are nondecreasing in p, so bin ordering == loss ordering, while
    # keeping the per-bin loss width small both near p~0 (p term dominates)
    # and near p~1 (loss term dominates).  Non-negatives map to bin NBINS so
    # a single equality test per bin yields both count and loss-sum.
    score = 0.5 * (p + negloss * jnp.float32(1.0 / LOSS_MAX))
    bin_f = jnp.clip(jnp.floor(score * jnp.float32(NBINS)),
                     0.0, float(NBINS - 1))
    bin_idx = jnp.where(neg > 0.5, bin_f.astype(jnp.int32), jnp.int32(NBINS))

    def _hist(b, carry):
        mf = (bin_idx == b).astype(jnp.float32)
        histcnt_ref[b] += jnp.sum(mf)
        histsum_ref[b] += jnp.sum(mf * negloss)
        return carry

    lax.fori_loop(0, NBINS, _hist, 0)


def _h_tile(h, w, target_bytes=512 * 1024):
    """H tile: multiple of 8 (f32 sublane tile), ~0.5 MiB per f32 input so the
    3 double-buffered inputs plus in-kernel temporaries stay comfortably inside
    the scoped-VMEM budget even on v7x (64 MiB physical)."""
    if h <= 8:
        return h
    max_rows = max(8, target_bytes // max(1, w * 4))
    t = int(min(h, max_rows))
    return max(8, (t // 8) * 8)


def balance_bce_loss(pred, gt_map, mask_map, negative_ratio=3, eps=1e-6):
    """BalanceCrossEntropyLoss(pred[:, 0], gt, mask) with OHEM top-k recovered
    from a monotone 64-bin histogram (single fused streaming pass, no sort)."""
    B, C, H, W = pred.shape
    th = _h_tile(H, W)
    grid = (B, pl.cdiv(H, th))

    kernel = functools.partial(_bce_ohem_kernel, h_total=H, th=th)

    out_shape = (
        jax.ShapeDtypeStruct((1,), jnp.float32),       # sum of positive losses
        jax.ShapeDtypeStruct((1,), jnp.int32),         # positive count
        jax.ShapeDtypeStruct((1,), jnp.int32),         # mask count
        jax.ShapeDtypeStruct((NBINS,), jnp.float32),   # neg-loss bin counts
        jax.ShapeDtypeStruct((NBINS,), jnp.float32),   # neg-loss bin sums
    )
    # TODO(synk): for v7x dual-TensorCore sharding, emit per-core partial
    # histograms/scalars and mark the batch axis "parallel"; kept "arbitrary"
    # (single resident SMEM accumulator) since v5e/v6e have one TC.
    pos_loss, pos_cnt, mask_cnt, hist_cnt, hist_sum = pl.pallas_call(
        kernel,
        out_shape=out_shape,
        grid_spec=pltpu.PrefetchScalarGridSpec(
            num_scalar_prefetch=0,
            grid=grid,
            in_specs=[
                # shrink map read straight out of pred[:, 0] -> no slice copy
                pl.BlockSpec((1, 1, th, W), lambda b, h: (b, 0, h, 0)),
                pl.BlockSpec((1, th, W), lambda b, h: (b, h, 0)),   # gt
                pl.BlockSpec((1, th, W), lambda b, h: (b, h, 0)),   # mask
            ],
            out_specs=(
                pl.BlockSpec(memory_space=pltpu.SMEM),
                pl.BlockSpec(memory_space=pltpu.SMEM),
                pl.BlockSpec(memory_space=pltpu.SMEM),
                pl.BlockSpec(memory_space=pltpu.SMEM),
                pl.BlockSpec(memory_space=pltpu.SMEM),
            ),
        ),
        compiler_params=pltpu.CompilerParams(
            dimension_semantics=("arbitrary", "arbitrary"),
            vmem_limit_bytes=32 * 1024 * 1024),
    )(pred.astype(jnp.float32), gt_map.astype(jnp.float32),
      mask_map.astype(jnp.float32))

    pos_cnt_i = pos_cnt[0]
    neg_total_i = mask_cnt[0] - pos_cnt_i
    k_i = jnp.minimum(neg_total_i, pos_cnt_i * jnp.int32(negative_ratio))
    k = k_i.astype(jnp.float32)
    pos_cnt_f = pos_cnt_i.astype(jnp.float32)

    # --- top-k sum of negative losses from the (NBINS,) histogram ----------
    rc = jnp.cumsum(hist_cnt[::-1])[::-1]      # rc[b] = #losses in bins >= b
    rs = jnp.cumsum(hist_sum[::-1])[::-1]      # rs[b] = sum of those losses
    rc_next = jnp.concatenate([rc[1:], jnp.zeros((1,), jnp.float32)])
    rs_next = jnp.concatenate([rs[1:], jnp.zeros((1,), jnp.float32)])
    # boundary bin j = largest b with rc[b] >= k
    j = jnp.maximum(jnp.sum((rc >= k).astype(jnp.int32)) - 1, 0)
    need = jnp.clip(k - rc_next[j], 0.0, jnp.maximum(hist_cnt[j], 0.0))
    bin_mean = hist_sum[j] / jnp.maximum(hist_cnt[j], 1.0)
    # TODO(synk): bin-mean boundary correction is approximate (error bounded
    # by need * boundary-bin loss width); exact top-k needs a refinement pass.
    topk_sum = jnp.where(k > 0.0, rs_next[j] + need * bin_mean, 0.0)

    return (pos_loss[0] + topk_sum) / (pos_cnt_f + k + jnp.float32(eps))


# ---------------------------------------------------------------------------
# Kernel 2: both polygon smooth-L1 (Huber, beta=1) sums in ONE tiny call.
# ---------------------------------------------------------------------------
def _smooth_l1_pair_kernel(a_ref, b_ref, gt_ref, out_ref):
    gt = gt_ref[...]
    da = a_ref[...] - gt
    db = b_ref[...] - gt
    ada = jnp.abs(da)
    adb = jnp.abs(db)
    la = jnp.where(ada < 1.0, 0.5 * da * da, ada - 0.5)
    lb = jnp.where(adb < 1.0, 0.5 * db * db, adb - 0.5)
    out_ref[0] = jnp.sum(la)
    out_ref[1] = jnp.sum(lb)


def smooth_l1_pair_mean(a, b, gt):
    # TODO(synk): polygon tensors are tiny (B*P*2 elems); one fused call keeps
    # launch overhead minimal — plain jnp would also be acceptable here.
    a2 = a.reshape(a.shape[0], -1).astype(jnp.float32)
    b2 = b.reshape(b.shape[0], -1).astype(jnp.float32)
    g2 = gt.reshape(gt.shape[0], -1).astype(jnp.float32)
    sums = pl.pallas_call(
        _smooth_l1_pair_kernel,
        out_shape=jax.ShapeDtypeStruct((2,), jnp.float32),
        in_specs=[pl.BlockSpec(memory_space=pltpu.VMEM)] * 3,
        out_specs=pl.BlockSpec(memory_space=pltpu.SMEM),
    )(a2, b2, g2)
    n = jnp.float32(a2.size)
    return sums[0] / n, sums[1] / n                    # reduction='mean'


# ---------------------------------------------------------------------------
# SEG_e2ec forward
# ---------------------------------------------------------------------------
@functools.partial(jax.jit, static_argnames=("alpha", "beta", "gama",
                                             "ohem_ratio", "has_pred_polys"))
def seg_e2ec_forward(pred, coarse_polys, pred_polys, text_gt_polys,
                     shrink_map, shrink_mask, alpha=1.0, beta=10.0, gama=0.5,
                     ohem_ratio=3, has_pred_polys=True, eps=1e-6):
    second = pred_polys if has_pred_polys else coarse_polys
    coarse_py_loss, pred_py_loss = smooth_l1_pair_mean(
        coarse_polys, second, text_gt_polys)

    loss_shrink_maps = balance_bce_loss(
        pred, shrink_map, shrink_mask, negative_ratio=ohem_ratio, eps=eps)

    loss_all = alpha * loss_shrink_maps + beta * coarse_py_loss
    metrics = dict(loss_shrink_maps=loss_shrink_maps,
                   coarse_py_loss=coarse_py_loss)
    if has_pred_polys:
        metrics["pred_py_loss"] = pred_py_loss
        loss_all = loss_all + pred_py_loss * gama
    metrics["loss"] = loss_all
    return metrics


# ---------------------------------------------------------------------------
# Pure-JAX reference (exact sort/top-k) for a sanity check at toy size.
# ---------------------------------------------------------------------------
def _reference_forward(pred, coarse_polys, pred_polys, text_gt_polys,
                       shrink_map, shrink_mask, alpha=1.0, beta=10.0,
                       gama=0.5, ohem_ratio=3, eps=1e-6):
    p = pred[:, 0, :, :]
    log_p = jnp.maximum(jnp.log(p), _LOG_CLAMP)
    log_1mp = jnp.maximum(jnp.log(1.0 - p), _LOG_CLAMP)
    bce = -(shrink_map * log_p + (1.0 - shrink_map) * log_1mp)
    pos = shrink_map * shrink_mask
    neg = (1.0 - shrink_map) * shrink_mask
    pos_cnt = jnp.sum(pos).astype(jnp.int32)
    neg_cnt = jnp.minimum(jnp.sum(neg).astype(jnp.int32), pos_cnt * ohem_ratio)
    pos_loss = jnp.sum(bce * pos)
    sorted_neg = jnp.sort((bce * neg).reshape(-1))[::-1]
    rank = jnp.arange(sorted_neg.size)
    topk = jnp.sum(jnp.where(rank < neg_cnt, sorted_neg, 0.0))
    bal = (pos_loss + topk) / (pos_cnt.astype(jnp.float32)
                               + neg_cnt.astype(jnp.float32) + eps)

    def _sl1(a, b):
        d = a - b
        ad = jnp.abs(d)
        return jnp.mean(jnp.where(ad < 1.0, 0.5 * d * d, ad - 0.5))

    c = _sl1(coarse_polys, text_gt_polys)
    pp = _sl1(pred_polys, text_gt_polys)
    return dict(loss_shrink_maps=bal, coarse_py_loss=c, pred_py_loss=pp,
                loss=alpha * bal + beta * c + gama * pp)


if __name__ == "__main__":
    key = jax.random.PRNGKey(0)
    kp, kg, km, kc, kpp, kt = jax.random.split(key, 6)

    B, C, H, W, P = 2, 2, 16, 16, 8
    pred = jax.nn.sigmoid(jax.random.normal(kp, (B, C, H, W), jnp.float32))
    shrink_map = (jax.random.uniform(kg, (B, H, W)) > 0.7).astype(jnp.float32)
    shrink_mask = (jax.random.uniform(km, (B, H, W)) > 0.1).astype(jnp.float32)
    coarse_polys = jax.random.normal(kc, (B, P, 2), jnp.float32)
    pred_polys = jax.random.normal(kpp, (B, P, 2), jnp.float32)
    text_gt_polys = jax.random.normal(kt, (B, P, 2), jnp.float32)

    metrics = seg_e2ec_forward(pred, coarse_polys, pred_polys,
                               text_gt_polys, shrink_map, shrink_mask)
    metrics = jax.block_until_ready(metrics)
    assert all(bool(jnp.isfinite(v)) for v in metrics.values())

    ref = _reference_forward(pred, coarse_polys, pred_polys, text_gt_polys,
                             shrink_map, shrink_mask)
    for name, val in ref.items():
        ok = jnp.allclose(metrics[name], val, rtol=1e-2, atol=1e-2)
        assert bool(ok), f"{name}: pallas={metrics[name]} ref={val}"

    print("KERNEL_OK")
</pallas_src>

<mosaic_0001>
module attributes {stable_mosaic.version = 11 : i64} {
  func.func @_bce_ohem_kernel(%arg0: i32, %arg1: i32, %arg2: memref<1x1x16x16xf32, #tpu.memory_space<vmem>>, %arg3: memref<1x16x16xf32, #tpu.memory_space<vmem>>, %arg4: memref<1x16x16xf32, #tpu.memory_space<vmem>>, %arg5: memref<1xf32, #tpu.memory_space<smem>>, %arg6: memref<1xi32, #tpu.memory_space<smem>>, %arg7: memref<1xi32, #tpu.memory_space<smem>>, %arg8: memref<64xf32, #tpu.memory_space<smem>>, %arg9: memref<64xf32, #tpu.memory_space<smem>>) attributes {dimension_semantics = [#tpu.dimension_semantics<arbitrary>, #tpu.dimension_semantics<arbitrary>], iteration_bounds = array<i64: 2, 1>, scalar_prefetch = 0 : i64, scratch_operands = 0 : i64, tpu.core_type = #tpu.core_type<tc>, window_params = [{transform_indices = @transform_0, window_bounds = array<i64: 1, 1, 16, 16>}, {transform_indices = @transform_1, window_bounds = array<i64: 1, 16, 16>}, {transform_indices = @transform_2, window_bounds = array<i64: 1, 16, 16>}, {transform_indices = @transform_3, window_bounds = array<i64: 1>}, {transform_indices = @transform_4, window_bounds = array<i64: 1>}, {transform_indices = @transform_5, window_bounds = array<i64: 1>}, {transform_indices = @transform_6, window_bounds = array<i64: 64>}, {transform_indices = @transform_7, window_bounds = array<i64: 64>}]} {
    %c0_i32 = arith.constant 0 : i32
    %0 = arith.cmpi eq, %arg0, %c0_i32 : i32
    %c0_i32_0 = arith.constant 0 : i32
    %1 = arith.cmpi eq, %arg1, %c0_i32_0 : i32
    %2 = arith.andi %0, %1 : i1
    %3 = arith.extui %2 : i1 to i32
    %c0_i32_1 = arith.constant 0 : i32
    %4 = arith.cmpi ne, %3, %c0_i32_1 : i32
    scf.if %4 {
      %cst_34 = arith.constant 0.000000e+00 : f32
      %c0_35 = arith.constant 0 : index
      %73 = memref.load %arg5[%c0_35] : memref<1xf32, #tpu.memory_space<smem>>
      memref.store %cst_34, %arg5[%c0_35] : memref<1xf32, #tpu.memory_space<smem>>
      %c0_i32_36 = arith.constant 0 : i32
      %c0_37 = arith.constant 0 : index
      %74 = memref.load %arg6[%c0_37] : memref<1xi32, #tpu.memory_space<smem>>
      memref.store %c0_i32_36, %arg6[%c0_37] : memref<1xi32, #tpu.memory_space<smem>>
      %c0_i32_38 = arith.constant 0 : i32
      %c0_39 = arith.constant 0 : index
      %75 = memref.load %arg7[%c0_39] : memref<1xi32, #tpu.memory_space<smem>>
      memref.store %c0_i32_38, %arg7[%c0_39] : memref<1xi32, #tpu.memory_space<smem>>
      %c0_i32_40 = arith.constant 0 : i32
      %c64_i32_41 = arith.constant 64 : i32
      %76 = arith.addi %c0_i32_40, %c64_i32_41 : i32
      %c1_i32_42 = arith.constant 1 : i32
      scf.for %arg10 = %c0_i32_40 to %76 step %c1_i32_42  : i32 {
        %cst_44 = arith.constant 0.000000e+00 : f32
        %77 = arith.index_cast %arg10 : i32 to index
        %78 = memref.load %arg8[%77] : memref<64xf32, #tpu.memory_space<smem>>
        memref.store %cst_44, %arg8[%77] : memref<64xf32, #tpu.memory_space<smem>>
        %cst_45 = arith.constant 0.000000e+00 : f32
        %79 = arith.index_cast %arg10 : i32 to index
        %80 = memref.load %arg9[%79] : memref<64xf32, #tpu.memory_space<smem>>
        memref.store %cst_45, %arg9[%79] : memref<64xf32, #tpu.memory_space<smem>>
      }
      %c64_i32_43 = arith.constant 64 : i32
    } else {
    }
    %c0 = arith.constant 0 : index
    %c0_2 = arith.constant 0 : index
    %c0_3 = arith.constant 0 : index
    %c0_4 = arith.constant 0 : index
    %5 = vector.load %arg2[%c0, %c0_2, %c0_3, %c0_4] : memref<1x1x16x16xf32, #tpu.memory_space<vmem>>, vector<1x1x16x16xf32>
    %6 = vector.shape_cast %5 : vector<1x1x16x16xf32> to vector<16x16xf32>
    %c0_5 = arith.constant 0 : index
    %c0_6 = arith.constant 0 : index
    %c0_7 = arith.constant 0 : index
    %7 = vector.load %arg3[%c0_5, %c0_6, %c0_7] : memref<1x16x16xf32, #tpu.memory_space<vmem>>, vector<1x16x16xf32>
    %8 = vector.shape_cast %7 : vector<1x16x16xf32> to vector<16x16xf32>
    %c0_8 = arith.constant 0 : index
    %c0_9 = arith.constant 0 : index
    %c0_10 = arith.constant 0 : index
    %9 = vector.load %arg4[%c0_8, %c0_9, %c0_10] : memref<1x16x16xf32, #tpu.memory_space<vmem>>, vector<1x16x16xf32>
    %10 = vector.shape_cast %9 : vector<1x16x16xf32> to vector<16x16xf32>
    %11 = math.log %6 : vector<16x16xf32>
    %cst = arith.constant -1.000000e+02 : f32
    %12 = vector.broadcast %cst : f32 to vector<16x16xf32>
    %13 = arith.maximumf %11, %12 : vector<16x16xf32>
    %cst_11 = arith.constant 1.000000e+00 : f32
    %14 = vector.broadcast %cst_11 : f32 to vector<16x16xf32>
    %15 = arith.subf %14, %6 : vector<16x16xf32>
    %16 = math.log %15 : vector<16x16xf32>
    %cst_12 = arith.constant -1.000000e+02 : f32
    %17 = vector.broadcast %cst_12 : f32 to vector<16x16xf32>
    %18 = arith.maximumf %16, %17 : vector<16x16xf32>
    %19 = arith.mulf %8, %13 : vector<16x16xf32>
    %cst_13 = arith.constant 1.000000e+00 : f32
    %20 = vector.broadcast %cst_13 : f32 to vector<16x16xf32>
    %21 = arith.subf %20, %8 : vector<16x16xf32>
    %22 = arith.mulf %21, %18 : vector<16x16xf32>
    %23 = arith.addf %19, %22 : vector<16x16xf32>
    %cst_14 = arith.constant 0.000000e+00 : f32
    %24 = vector.broadcast %cst_14 : f32 to vector<16x16xf32>
    %25 = arith.subf %24, %23 : vector<16x16xf32>
    %26 = arith.mulf %8, %10 : vector<16x16xf32>
    %cst_15 = arith.constant 1.000000e+00 : f32
    %27 = vector.broadcast %cst_15 : f32 to vector<16x16xf32>
    %28 = arith.subf %27, %8 : vector<16x16xf32>
    %29 = arith.mulf %28, %10 : vector<16x16xf32>
    %30 = arith.mulf %25, %29 : vector<16x16xf32>
    %c0_16 = arith.constant 0 : index
    %31 = memref.load %arg5[%c0_16] : memref<1xf32, #tpu.memory_space<smem>>
    %32 = arith.mulf %25, %26 : vector<16x16xf32>
    %33 = vector.shape_cast %32 : vector<16x16xf32> to vector<1x16x16xf32>
    %cst_17 = arith.constant dense<0.000000e+00> : vector<1xf32>
    %34 = vector.multi_reduction <add>, %33, %cst_17 [1, 2] : vector<1x16x16xf32> to vector<1xf32>
    %35 = vector.shape_cast %34 : vector<1xf32> to vector<1x1x1xf32>
    %36 = vector.extract %35[0, 0, 0] : f32 from vector<1x1x1xf32>
    %37 = arith.addf %31, %36 : f32
    %c0_18 = arith.constant 0 : index
    %38 = memref.load %arg5[%c0_18] : memref<1xf32, #tpu.memory_space<smem>>
    memref.store %37, %arg5[%c0_18] : memref<1xf32, #tpu.memory_space<smem>>
    %c0_19 = arith.constant 0 : index
    %39 = memref.load %arg6[%c0_19] : memref<1xi32, #tpu.memory_space<smem>>
    %40 = vector.shape_cast %26 : vector<16x16xf32> to vector<1x16x16xf32>
    %cst_20 = arith.constant dense<0.000000e+00> : vector<1xf32>
    %41 = vector.multi_reduction <add>, %40, %cst_20 [1, 2] : vector<1x16x16xf32> to vector<1xf32>
    %42 = vector.shape_cast %41 : vector<1xf32> to vector<1x1x1xf32>
    %43 = vector.extract %42[0, 0, 0] : f32 from vector<1x1x1xf32>
    %44 = arith.fptosi %43 : f32 to i32
    %45 = arith.addi %39, %44 : i32
    %c0_21 = arith.constant 0 : index
    %46 = memref.load %arg6[%c0_21] : memref<1xi32, #tpu.memory_space<smem>>
    memref.store %45, %arg6[%c0_21] : memref<1xi32, #tpu.memory_space<smem>>
    %c0_22 = arith.constant 0 : index
    %47 = memref.load %arg7[%c0_22] : memref<1xi32, #tpu.memory_space<smem>>
    %48 = vector.shape_cast %10 : vector<16x16xf32> to vector<1x16x16xf32>
    %cst_23 = arith.constant dense<0.000000e+00> : vector<1xf32>
    %49 = vector.multi_reduction <add>, %48, %cst_23 [1, 2] : vector<1x16x16xf32> to vector<1xf32>
    %50 = vector.shape_cast %49 : vector<1xf32> to vector<1x1x1xf32>
    %51 = vector.extract %50[0, 0, 0] : f32 from vector<1x1x1xf32>
    %52 = arith.fptosi %51 : f32 to i32
    %53 = arith.addi %47, %52 : i32
    %c0_24 = arith.constant 0 : index
    %54 = memref.load %arg7[%c0_24] : memref<1xi32, #tpu.memory_space<smem>>
    memref.store %53, %arg7[%c0_24] : memref<1xi32, #tpu.memory_space<smem>>
    %cst_25 = arith.constant 0.0617283955 : f32
    %55 = vector.broadcast %cst_25 : f32 to vector<16x16xf32>
    %56 = arith.mulf %30, %55 : vector<16x16xf32>
    %57 = arith.addf %6, %56 : vector<16x16xf32>
    %cst_26 = arith.constant 5.000000e-01 : f32
    %58 = vector.broadcast %cst_26 : f32 to vector<16x16xf32>
    %59 = arith.mulf %58, %57 : vector<16x16xf32>
    %cst_27 = arith.constant 6.400000e+01 : f32
    %60 = vector.broadcast %cst_27 : f32 to vector<16x16xf32>
    %61 = arith.mulf %59, %60 : vector<16x16xf32>
    %62 = math.floor %61 : vector<16x16xf32>
    %cst_28 = arith.constant 0.000000e+00 : f32
    %cst_29 = arith.constant 6.300000e+01 : f32
    %63 = vector.broadcast %cst_28 : f32 to vector<16x16xf32>
    %64 = arith.maximumf %63, %62 : vector<16x16xf32>
    %65 = vector.broadcast %cst_29 : f32 to vector<16x16xf32>
    %66 = arith.minimumf %65, %64 : vector<16x16xf32>
    %cst_30 = arith.constant 5.000000e-01 : f32
    %67 = vector.broadcast %cst_30 : f32 to vector<16x16xf32>
    %68 = arith.cmpf ogt, %29, %67 : vector<16x16xf32>
    %69 = arith.fptosi %66 : vector<16x16xf32> to vector<16x16xi32>
    %c64_i32 = arith.constant 64 : i32
    %70 = vector.broadcast %c64_i32 : i32 to vector<16x16xi32>
    %71 = arith.select %68, %69, %70 : vector<16x16xi1>, vector<16x16xi32>
    %c0_i32_31 = arith.constant 0 : i32
    %c64_i32_32 = arith.constant 64 : i32
    %72 = arith.addi %c0_i32_31, %c64_i32_32 : i32
    %c1_i32 = arith.constant 1 : i32
    scf.for %arg10 = %c0_i32_31 to %72 step %c1_i32  : i32 {
      %73 = vector.broadcast %arg10 : i32 to vector<16x16xi32>
      %74 = arith.cmpi eq, %71, %73 : vector<16x16xi32>
      %75 = arith.extui %74 : vector<16x16xi1> to vector<16x16xi32>
      %76 = arith.sitofp %75 : vector<16x16xi32> to vector<16x16xf32>
      %77 = arith.index_cast %arg10 : i32 to index
      %78 = memref.load %arg8[%77] : memref<64xf32, #tpu.memory_space<smem>>
      %79 = vector.shape_cast %76 : vector<16x16xf32> to vector<1x16x16xf32>
      %cst_34 = arith.constant dense<0.000000e+00> : vector<1xf32>
      %80 = vector.multi_reduction <add>, %79, %cst_34 [1, 2] : vector<1x16x16xf32> to vector<1xf32>
      %81 = vector.shape_cast %80 : vector<1xf32> to vector<1x1x1xf32>
      %82 = vector.extract %81[0, 0, 0] : f32 from vector<1x1x1xf32>
      %83 = arith.addf %78, %82 : f32
      %84 = arith.index_cast %arg10 : i32 to index
      %85 = memref.load %arg8[%84] : memref<64xf32, #tpu.memory_space<smem>>
      memref.store %83, %arg8[%84] : memref<64xf32, #tpu.memory_space<smem>>
      %86 = arith.index_cast %arg10 : i32 to index
      %87 = memref.load %arg9[%86] : memref<64xf32, #tpu.memory_space<smem>>
      %88 = arith.mulf %76, %30 : vector<16x16xf32>
      %89 = vector.shape_cast %88 : vector<16x16xf32> to vector<1x16x16xf32>
      %cst_35 = arith.constant dense<0.000000e+00> : vector<1xf32>
      %90 = vector.multi_reduction <add>, %89, %cst_35 [1, 2] : vector<1x16x16xf32> to vector<1xf32>
      %91 = vector.shape_cast %90 : vector<1xf32> to vector<1x1x1xf32>
      %92 = vector.extract %91[0, 0, 0] : f32 from vector<1x1x1xf32>
      %93 = arith.addf %87, %92 : f32
      %94 = arith.index_cast %arg10 : i32 to index
      %95 = memref.load %arg9[%94] : memref<64xf32, #tpu.memory_space<smem>>
      memref.store %93, %arg9[%94] : memref<64xf32, #tpu.memory_space<smem>>
    }
    %c64_i32_33 = arith.constant 64 : i32
    return
  }
  func.func @transform_0(%arg0: i32, %arg1: i32) -> (i32, i32, i32, i32) {
    %c0_i32 = arith.constant 0 : i32
    %c0_i32_0 = arith.constant 0 : i32
    %c0_i32_1 = arith.constant 0 : i32
    return %arg0, %c0_i32, %arg1, %c0_i32_0 : i32, i32, i32, i32
  }
  func.func @transform_1(%arg0: i32, %arg1: i32) -> (i32, i32, i32) {
    %c0_i32 = arith.constant 0 : i32
    %c0_i32_0 = arith.constant 0 : i32
    return %arg0, %arg1, %c0_i32 : i32, i32, i32
  }
  func.func @transform_2(%arg0: i32, %arg1: i32) -> (i32, i32, i32) {
    %c0_i32 = arith.constant 0 : i32
    %c0_i32_0 = arith.constant 0 : i32
    return %arg0, %arg1, %c0_i32 : i32, i32, i32
  }
  func.func @transform_3(%arg0: i32, %arg1: i32) -> i32 {
    %c0_i32 = arith.constant 0 : i32
    %c0_i32_0 = arith.constant 0 : i32
    return %c0_i32 : i32
  }
  func.func @transform_4(%arg0: i32, %arg1: i32) -> i32 {
    %c0_i32 = arith.constant 0 : i32
    %c0_i32_0 = arith.constant 0 : i32
    return %c0_i32 : i32
  }
  func.func @transform_5(%arg0: i32, %arg1: i32) -> i32 {
    %c0_i32 = arith.constant 0 : i32
    %c0_i32_0 = arith.constant 0 : i32
    return %c0_i32 : i32
  }
  func.func @transform_6(%arg0: i32, %arg1: i32) -> i32 {
    %c0_i32 = arith.constant 0 : i32
    %c0_i32_0 = arith.constant 0 : i32
    return %c0_i32 : i32
  }
  func.func @transform_7(%arg0: i32, %arg1: i32) -> i32 {
    %c0_i32 = arith.constant 0 : i32
    %c0_i32_0 = arith.constant 0 : i32
    return %c0_i32 : i32
  }
}

module attributes {stable_mosaic.version = 11 : i64} {
  func.func @_smooth_l1_pair_kernel(%arg0: memref<2x16xf32, #tpu.memory_space<vmem>>, %arg1: memref<2x16xf32, #tpu.memory_space<vmem>>, %arg2: memref<2x16xf32, #tpu.memory_space<vmem>>, %arg3: memref<2xf32, #tpu.memory_space<smem>>) attributes {dimension_semantics = [], scalar_prefetch = 0 : i64, scratch_operands = 0 : i64, tpu.core_type = #tpu.core_type<tc>} {
    %c0 = arith.constant 0 : index
    %c0_0 = arith.constant 0 : index
    %0 = vector.load %arg2[%c0, %c0_0] : memref<2x16xf32, #tpu.memory_space<vmem>>, vector<2x16xf32>
    %c0_1 = arith.constant 0 : index
    %c0_2 = arith.constant 0 : index
    %1 = vector.load %arg0[%c0_1, %c0_2] : memref<2x16xf32, #tpu.memory_space<vmem>>, vector<2x16xf32>
    %2 = arith.subf %1, %0 : vector<2x16xf32>
    %c0_3 = arith.constant 0 : index
    %c0_4 = arith.constant 0 : index
    %3 = vector.load %arg1[%c0_3, %c0_4] : memref<2x16xf32, #tpu.memory_space<vmem>>, vector<2x16xf32>
    %4 = arith.subf %3, %0 : vector<2x16xf32>
    %5 = math.absf %2 : vector<2x16xf32>
    %6 = math.absf %4 : vector<2x16xf32>
    %cst = arith.constant 1.000000e+00 : f32
    %7 = vector.broadcast %cst : f32 to vector<2x16xf32>
    %8 = arith.cmpf olt, %5, %7 : vector<2x16xf32>
    %cst_5 = arith.constant 5.000000e-01 : f32
    %9 = vector.broadcast %cst_5 : f32 to vector<2x16xf32>
    %10 = arith.mulf %9, %2 : vector<2x16xf32>
    %11 = arith.mulf %10, %2 : vector<2x16xf32>
    %cst_6 = arith.constant 5.000000e-01 : f32
    %12 = vector.broadcast %cst_6 : f32 to vector<2x16xf32>
    %13 = arith.subf %5, %12 : vector<2x16xf32>
    %14 = arith.select %8, %11, %13 : vector<2x16xi1>, vector<2x16xf32>
    %cst_7 = arith.constant 1.000000e+00 : f32
    %15 = vector.broadcast %cst_7 : f32 to vector<2x16xf32>
    %16 = arith.cmpf olt, %6, %15 : vector<2x16xf32>
    %cst_8 = arith.constant 5.000000e-01 : f32
    %17 = vector.broadcast %cst_8 : f32 to vector<2x16xf32>
    %18 = arith.mulf %17, %4 : vector<2x16xf32>
    %19 = arith.mulf %18, %4 : vector<2x16xf32>
    %cst_9 = arith.constant 5.000000e-01 : f32
    %20 = vector.broadcast %cst_9 : f32 to vector<2x16xf32>
    %21 = arith.subf %6, %20 : vector<2x16xf32>
    %22 = arith.select %16, %19, %21 : vector<2x16xi1>, vector<2x16xf32>
    %23 = vector.shape_cast %14 : vector<2x16xf32> to vector<1x2x16xf32>
    %cst_10 = arith.constant dense<0.000000e+00> : vector<1xf32>
    %24 = vector.multi_reduction <add>, %23, %cst_10 [1, 2] : vector<1x2x16xf32> to vector<1xf32>
    %25 = vector.shape_cast %24 : vector<1xf32> to vector<1x1x1xf32>
    %26 = vector.extract %25[0, 0, 0] : f32 from vector<1x1x1xf32>
    %c0_11 = arith.constant 0 : index
    %27 = memref.load %arg3[%c0_11] : memref<2xf32, #tpu.memory_space<smem>>
    memref.store %26, %arg3[%c0_11] : memref<2xf32, #tpu.memory_space<smem>>
    %28 = vector.shape_cast %22 : vector<2x16xf32> to vector<1x2x16xf32>
    %cst_12 = arith.constant dense<0.000000e+00> : vector<1xf32>
    %29 = vector.multi_reduction <add>, %28, %cst_12 [1, 2] : vector<1x2x16xf32> to vector<1xf32>
    %30 = vector.shape_cast %29 : vector<1xf32> to vector<1x1x1xf32>
    %31 = vector.extract %30[0, 0, 0] : f32 from vector<1x1x1xf32>
    %c1 = arith.constant 1 : index
    %32 = memref.load %arg3[%c1] : memref<2xf32, #tpu.memory_space<smem>>
    memref.store %31, %arg3[%c1] : memref<2xf32, #tpu.memory_space<smem>>
    return
  }
}

</mosaic_0001>

<bundles_post_ra>
// kernel: reverse.1
= control target key start
LH: loop header
LB: loop body
LE: loop exit
PB: predicated region body
PF: predicated region fallthrough
CT: control target
= control target key end

     0   :  { %v2_v0 = vlaneseq  ;;  %s127_s0 = inlined_call_operand.vmem [shape: f32[63], index: 0, kind: input, shape index: {}]   ;;  %s128_s1 = inlined_call_operand.vmem [shape: f32[63], index: 1, kind: output, shape index: {}]  }
   0x2   :  { %v3_v1 = vsub.s32 62, %v2_v0 }
   0x4   :  { %4 = vset.pattern.permute.xlu0 %v3_v1 }
   0x5   :  { %v45_v2 = vld [vmem:[#allocation1] sm:$0x1]  ;;  %v22_v3 = vld [vmem:[%s127_s0] sm:$0x1]  ;;  %v60_v10 = vshrl.u32 %v2_v0, 7 }
   0x6   :  { %46 = vst [vmem:[#allocation0] sm:$0x1] %v45_v2 }
   0x7   :  { %23 = vst [vmem:[#allocation1 + $0x1] sm:$0x1] %v22_v3  ;;  %vm61_vm0 = vcmp.lt.s32.totalorder %v60_v10, 1 }
   0xd   :  { %v48_v4 = vld [vmem:[#allocation0 + $0x7] ss:$-1 sm:$0xff] }
   0xe   :  { %v49_v5 = vrot.slane %v48_v4, 7  ;;  %v42_v6 = vld [vmem:[#allocation1 + $0x1] sm:$0x1] }
   0xf   :  { %44 = vst [vmem:[#allocation0 + $0x8] sm:$0x1] %v42_v6 }
  0x10   :  { %50 = vperm.xlu0 %4, %v49_v5  }
  0x16   :  { %v55_v7 = vld [vmem:[#allocation0 + $0xf] ss:$-1 sm:$0xff] }
  0x17   :  { %v56_v8 = vrot.slane %v55_v7, 7 }
  0x19   :  { %57 = vperm.xlu0 %4, %v56_v8  }
  0x82   :  { %v51_v9 = vpop.permute.xlu0 %50 }
  0x83   :  { %52 = vst [vmem:[#allocation2] sm:$0xff] %v51_v9 }
  0x8b   :  { %v58_v11 = vpop.permute.xlu0 %57 }
  0x8c   :  { %62 = vst.msk [vmem:[#allocation2] sm:$0xff] %vm61_vm0, %v58_v11 }
  0x93   :  { %v65_v12 = vld [vmem:[#allocation2] sm:$0x1] }
  0x94   :  { %68 = vst [vmem:[#allocation3] sm:$0x1] %v65_v12 }
  0x9b   :  { %v85_v13 = vld [vmem:[#allocation3] sm:$0x1] }
  0x9c   :  { %86 = vst [vmem:[%s128_s1] sm:$0x1] %v85_v13 }

// kernel: seg_e2ec_forward.3
= control target key start
LH: loop header
LB: loop body
LE: loop exit
PB: predicated region body
PF: predicated region fallthrough
CT: control target
= control target key end

     0   :  { %s1478_s0 = inlined_call_operand.hbm [shape: f32[2,2,16,16], index: 0, kind: input, shape index: {}]   ;;  %s1479_s1 = inlined_call_operand.hbm [shape: f32[2,16,16], index: 1, kind: input, shape index: {}]   ;;  %s1480_s2 = inlined_call_operand.hbm [shape: f32[2,16,16], index: 2, kind: input, shape index: {}]   ;;  %s1481_s3 = inlined_call_operand.hbm [shape: f32[1], index: 3, kind: output, shape index: {0}]   ;;  %s1482_s4 = inlined_call_operand.hbm [shape: s32[1], index: 4, kind: output, shape index: {1}]   ;;  %s1483_s5 = inlined_call_operand.hbm [shape: s32[1], index: 5, kind: output, shape index: {2}]   ;;  %s1484_s6 = inlined_call_operand.vmem [shape: f32[64], index: 6, kind: output, shape index: {3}]   ;;  %s1485_s7 = inlined_call_operand.vmem [shape: f32[64], index: 7, kind: output, shape index: {4}]  }
   0x1   :  { %1488 = sst [smem:[#allocation25_spill]] %s1479_s1 }
   0x2   :  { %13 = vsyncpa [#allocation3], 0 }
   0x3   :  { %15 = vsyncpa [#allocation3 + $0x1], 0 }
   0x4   :  { %16 = vsyncpa [#allocation7], 0 }
   0x5   :  { %18 = vsyncpa [#allocation7 + $0x1], 0 }
   0x6   :  { %19 = vsyncpa [#allocation4], 0 }
   0x7   :  { %20 = vsyncpa [#allocation11], 0 }
   0x8   :  { %21 = vsyncpa [#allocation5], 0 }
   0x9   :  { %22 = vsyncpa [#allocation15], 0  ;;  %s1275_s24 = smov 0   ;;  %s1277_s25 = smov 0  }
   0xa   :  { %s1279_s26 = smov 0   ;;  %s1281_s27 = smov 0  }
   0xb   :  { %s1283_s28 = smov 0   ;;  %s1285_s29 = smov 0  }
   0xc LB: > { %1489 = sst [smem:[#allocation22_spill]] %s1202_s26  ;;  %s1304_s30 = sadd.s32 4294967295, %s1214_s29   ;;  %s1214_s29 = sphi %s1285_s29, %s28_s29   ;;  %s1210_s28 = sphi %s1283_s28, %s1502_s28   ;;  %s1206_s27 = sphi %s1281_s27, %s1501_s27   ;;  %s1202_s26 = sphi %s1279_s26, %s1497_s26   ;;  %s1198_s25 = sphi %s1277_s25, %s1500_s25   ;;  %s1194_s24 = sphi %s1275_s24, %s1499_s24  }
   0xd   : > { %s40_s8 = sadd.s32 1, %s1210_s28  ;;  %s49_s9 = sadd.s32 1, %s1202_s26 }
   0xe   : > { %p42_p0 = scmp.ge.s32.totalorder %s40_s8, 2  ;;  %p56_p1 = scmp.ne.s32.totalorder %s1202_s26, %s1198_s25 }
   0xf   : > { %p57_p2 = scmp.eq.s32.totalorder %s1214_s29, 0  ;;  %p62_p4 = scmp.ne.s32.totalorder %s1198_s25, %s1194_s24 }
  0x10   : > { %s1504_s8 = smov (%p42_p0, %s40_s8), 0  ;;  %p63_p5 = scmp.eq.s32.totalorder %s1304_s30, 0 }
  0x11   : > { %1490 = sst [smem:[#allocation23_spill]] %s1504_s8  ;;  %p58_p3 = por %p57_p2, %p56_p1 }
  0x12   : > { %s44_s10 = ssub.s32 %s1210_s28, %s1504_s8  ;;  %p1317_p7 = por %p63_p5, %p62_p4 }
  0x13   : > { %p47_p6 = scmp.eq.s32.totalorder %s44_s10, 0  ;;  %p882_p8 = scmp.lt.s32.totalorder %s1214_s29, 2 }
  0x14   : > { %s247_s13 = sand.u32 1, %s1202_s26   ;;  %s271_s16 = sand.u32 1, %s1214_s29  }
  0x15   : > { %s1323_s12 = scalar_select %p47_p6, %s1202_s26, %s49_s9  }
  0x16   : > { %p1326_p9 = pnand %p882_p8, %p58_p3  ;;  %s1330_s15 = sshll.u32 %s247_s13, 4 }
  0x17   : > { %1492 = sst [smem:[#allocation24_spill]] %s1323_s12  ;;  %s819_s17 = sshll.u32 %s1210_s28, 4 }
  0x18   : > { %s1494_s1 = sld [smem:[#allocation25_spill]]  ;;  %s275_s21 = scalar_lea.vmem [#allocation6], %s1330_s15 }
  0x19   : > { %s285_s22 = sshll.u32 %s275_s21, 4  ;;  %s306_s10 = scalar_lea.hbm %s1480_s2, %s819_s17  ;;  %s286_s22 = int_to_ptr.vmem [resolvable:$true] %s285_s22 }
  0x1a   : > { %s272_s8 = scalar_lea.sflag [#allocation7], %s271_s16  ;;  %s1224_s12 = smov 128  }
  0x1b   : > { %s1225_s26 = smov 8   ;;  %s307_s18 = sshll.u32 %s306_s10, 4  ;;  %s308_s18 = int_to_ptr.hbm [resolvable:$true] %s307_s18 }
  0x1c   : > { %p799_p10 = scmp.ge.s32.totalorder %s1214_s29, 1  ;;  %p317_p11 = scmp.lt.s32.totalorder %s1214_s29, 3 }
  0x1e   : > { %s282_s20 = scalar_lea.hbm %s1494_s1, %s819_s17  ;;  %p1345_p12 = pnand %p799_p10, %p317_p11 }
  0x1f   : > { %s283_s23 = sshll.u32 %s282_s20, 4  ;;  %s818_s20 = sshll.u32 %s1210_s28, 5  ;;  %s284_s23 = int_to_ptr.hbm [resolvable:$true] %s283_s23 }
  0x20   : > { %878 = dma.hbm_to_vmem [thread:$0]  (!%p1326_p9), %s284_s23, 256, %s286_s22, %s272_s8, %s1224_s12, %s1224_s12, %s1225_s26  }
  0x21   : > { %s258_s16 = scalar_lea.hbm %s1478_s0, %s818_s20  ;;  %s251_s17 = scalar_lea.vmem [#allocation2], %s1330_s15 }
  0x22   : > { %s261_s9 = sshll.u32 %s251_s17, 4  ;;  %s259_s1 = sshll.u32 %s258_s16, 4  ;;  %s262_s9 = int_to_ptr.vmem [resolvable:$true] %s261_s9  ;;  %s260_s1 = int_to_ptr.hbm [resolvable:$true] %s259_s1 }
  0x23   : > { %s248_s22 = scalar_lea.sflag [#allocation3], %s247_s13  ;;  %s299_s23 = scalar_lea.vmem [#allocation8], %s1330_s15 }
  0x24   : > { %875 = dma.hbm_to_vmem [thread:$0]  (!%p1326_p9), %s260_s1, 256, %s262_s9, %s248_s22, %s1224_s12, %s1224_s12, %s1225_s26  }
  0x25   : > { %s309_s10 = sshll.u32 %s299_s23, 4  ;;  %321 = sbr.rel (%p1345_p12) target bundleno = 495 (0x1ef), region = 32  ;;  %s310_s10 = int_to_ptr.vmem [resolvable:$true] %s309_s10 }
  0x26   : > { %881 = dma.hbm_to_vmem [thread:$0]  (!%p1326_p9), %s308_s18, 256, %s310_s10, %s272_s8, %s1224_s12, %s1224_s12, %s1225_s26  }
  0x27   : > { %s323_s21 = sand.u32 (!%p1345_p12), 1, %s1198_s25  }
  0x28   : > { %s1362_s20 = sshll.u32 (!%p1345_p12), %s323_s21, 4  ;;  %s324_s24 = scalar_lea.sflag (!%p1345_p12), [#allocation3], %s323_s21 }
  0x29   : > { %s327_s16 = scalar_lea.vmem (!%p1345_p12), [#allocation2], %s1362_s20 }
  0x2a   : > { %1169 = dma.done.wait (%p1317_p7), %s324_s24, 256  }
  0x2b   : > { %1171 = vsyncadd (%p1317_p7), %s324_s24, 4294967040  ;;  %s333_s1 = sand.u32 1, %s1304_s30   ;;  %s337_s8 = scalar_lea.vmem [#allocation6], %s1362_s20 }
  0x2c   : > { %s334_s26 = scalar_lea.sflag [#allocation7], %s333_s1 }
  0x2d   : > { %1173 = dma.done.wait (%p1317_p7), %s334_s26, 512  }
  0x2e   : > { %1175 = vsyncadd (%p1317_p7), %s334_s26, 4294966784  ;;  %p387_p13 = scmp.eq.s32.totalorder %s1206_s27, 0  ;;  %s347_s12 = scalar_lea.vmem [#allocation8], %s1362_s20 }
  0x2f   : > { %s1226_s13 = smov (%p387_p13), 0.0   ;;  %s1227_s14 = smov (%p387_p13), 0  }
  0x30   : > { %392 = sbr.rel (!%p387_p13) target bundleno = 63 (0x3f), region = 48  ;;  %394 = sst [smem:[#allocation9]] (%p387_p13), %s1226_s13 }
  0x31   : > { %396 = sst [smem:[#allocation10]] (%p387_p13), %s1227_s14  ;;  %s1216_s15 = smov (%p387_p13), 0  }
  0x32   : > { %398 = sst [smem:[#allocation12]] (%p387_p13), %s1227_s14 }
  0x35 LB: >> { %s405_s18 = scalar_lea.smem [#allocation13], %s1218_s15  ;;  %s1228_s19 = smov 0.0   ;;  %s1218_s15 = sphi %s1216_s15, %s404_s15  }
  0x36   : >> { %406 = sst [smem:[%s405_s18]] %s1228_s19  ;;  %s407_s17 = scalar_lea.smem [#allocation14], %s1218_s15 }
  0x37   : >> { %408 = sst [smem:[%s407_s17]] %s1228_s19  ;;  %s404_s15 = sadd.s32 1, %s1218_s15  }
  0x38   : >> { %p401_p0 = scmp.ge.s32.totalorder %s404_s15, 64  }
  0x3a   : > { %403 = sbr.rel (!%p401_p0) target bundleno = 53 (0x35), region = 154 }
  0x3f PF: > { %v409_v0 = vld [vmem:[%s327_s16] sm:$0xff]  ;;  %v410_v1 = vld [vmem:[%s327_s16 + $0x8] sm:$0xff]  ;;  %vm448_vm0 = vcmask 130048   ;;  %s445_s27 = sld [smem:[#allocation9]]  ;;  %s1397_s14 = smov 0  }
  0x40   : > { %v411_v2 = vld [vmem:[%s337_s8] sm:$0xff]  ;;  %v412_v3 = vld [vmem:[%s337_s8 + $0x8] sm:$0xff]  ;;  %968 = vlog2.f32 %v409_v0  ;;  %v421_v4 = vsub.f32 1.0, %v409_v0  ;;  %v422_v5 = vsub.f32 1.0, %v410_v1  ;;  %s464_s22 = sld [smem:[#allocation10]] }
  0x41   : > { %v431_v6 = vsub.f32 1.0, %v411_v2  ;;  %v413_v7 = vld [vmem:[%s347_s12] sm:$0xff]  ;;  %v414_v8 = vld [vmem:[%s347_s12 + $0x8] sm:$0xff]  ;;  %970 = vlog2.f32 %v410_v1  ;;  %v432_v9 = vsub.f32 1.0, %v412_v3  ;;  %s481_s10 = sld [smem:[#allocation12]] }
  0x42   : > { %972 = vlog2.f32 %v421_v4  ;;  %v482_v11 = vsel %vm448_vm0, %v413_v7, 0.0  ;;  %v483_v12 = vsel %vm448_vm0, %v414_v8, 0.0  ;;  %v439_v32 = vmul.f32 %v413_v7, %v411_v2 }
  0x43   : > { %v441_v10 = vmul.f32 %v431_v6, %v413_v7  ;;  %974 = vlog2.f32 %v422_v5  ;;  %v442_v13 = vmul.f32 %v432_v9, %v414_v8  ;;  %v484_v14 = vadd.f32 %v483_v12, %v482_v11 }
  0x44   : > { %v440_v34 = vmul.f32 %v414_v8, %v412_v3  ;;  %v465_v50 = vsel %vm448_vm0, %v439_v32, 0.0 }
  0x45   : > { %485 = vadd.xlane.f32.xlu1 %v484_v14  ;;  %vm512_vm1 = vcmp.gt.f32.partialorder %v441_v10, 0.5  ;;  %vm513_vm2 = vcmp.gt.f32.partialorder %v442_v13, 0.5 }
  0x46   : > { %v969_v15 = vpop.eup %968  ;;  %v466_v51 = vsel %vm448_vm0, %v440_v34, 0.0 }
  0x47   : > { %v971_v16 = vpop.eup %970  ;;  %v416_v17 = vmul.f32 0.6931472, %v969_v15  ;;  %v467_v55 = vadd.f32 %v466_v51, %v465_v50 }
  0x48   : > { %v973_v18 = vpop.eup %972  ;;  %v418_v19 = vmul.f32 0.6931472, %v971_v16 }
  0x49   : > { %v975_v20 = vpop.eup %974  ;;  %v419_v21 = vmax.f32 %v416_v17, -100.0  ;;  %v424_v22 = vmul.f32 0.6931472, %v973_v18 }
  0x4a   : > { %v420_v23 = vmax.f32 %v418_v19, -100.0  ;;  %v426_v24 = vmul.f32 0.6931472, %v975_v20 }
  0x4b   : > { %v427_v25 = vmax.f32 %v424_v22, -100.0  ;;  %v429_v26 = vmul.f32 %v419_v21, %v411_v2 }
  0x4c   : > { %v428_v27 = vmax.f32 %v426_v24, -100.0  ;;  %v430_v28 = vmul.f32 %v420_v23, %v412_v3 }
  0x4d   : > { %v433_v29 = vmul.f32 %v431_v6, %v427_v25 }
  0x4e   : > { %v434_v30 = vmul.f32 %v432_v9, %v428_v27 }
  0x4f   : > { %v435_v31 = vadd.f32 %v433_v29, %v429_v26 }
  0x50   : > { %v436_v33 = vadd.f32 %v434_v30, %v430_v28 }
  0x51   : > { %v437_v35 = vsub.f32 0.0, %v435_v31 }
  0x52   : > { %v438_v36 = vsub.f32 0.0, %v436_v33 }
  0x53   : > { %v446_v37 = vmul.f32 %v439_v32, %v437_v35  ;;  %v1383_v38 = vmul.f32 %v441_v10, %v437_v35 }
  0x54   : > { %v1385_v39 = vmul.f32 %v442_v13, %v438_v36  ;;  %v447_v40 = vmul.f32 %v440_v34, %v438_v36 }
  0x55   : > { %v449_v41 = vsel %vm448_vm0, %v446_v37, 0.0  ;;  %v498_v42 = vmul.f32 0.061728396, %v1383_v38 }
  0x56   : > { %v450_v43 = vsel %vm448_vm0, %v447_v40, 0.0  ;;  %v499_v44 = vmul.f32 0.061728396, %v1385_v39 }
  0x57   : > { %v451_v45 = vadd.f32 %v450_v43, %v449_v41  ;;  %v500_v46 = vadd.f32 %v498_v42, %v409_v0 }
  0x58   : > { %v501_v47 = vadd.f32 %v499_v44, %v410_v1 }
  0x59   : > { %452 = vadd.xlane.f32.xlu0 %v451_v45  ;;  %v502_v48 = vmul.f32 0.5, %v500_v46 }
  0x5a   : > { %v503_v49 = vmul.f32 0.5, %v501_v47 }
  0x5b   : > { %v504_v52 = vmul.f32 64.0, %v502_v48 }
  0x5c   : > { %v505_v53 = vmul.f32 64.0, %v503_v49 }
  0x5d   : > { %v506_v54 = vfloor.f32 %v504_v52 }
  0x5e   : > { %v507_v56 = vfloor.f32 %v505_v53 }
  0x5f   : > { %v508_v57 = vmax.f32 %v506_v54, 0.0 }
  0x60   : > { %v509_v58 = vmax.f32 %v507_v56, 0.0 }
  0x61   : > { %v510_v59 = vmin.f32 %v508_v57, 63.0  ;;  %468 = vadd.xlane.f32.xlu0 %v467_v55 }
  0x62   : > { %v511_v60 = vmin.f32 %v509_v58, 63.0 }
  0x63   : > { %v839_v61 = vcvt.f32.s32 %v510_v59 }
  0x64   : > { %v841_v62 = vcvt.f32.s32 %v511_v60 }
  0x65   : > { %v1393_v63 = vsel %vm512_vm1, %v839_v61, 64 }
  0x66   : > { %v1395_v0 = vsel %vm513_vm2, %v841_v62, 64 }
  0xb8   : > { %v486_v1 = vpop.xlane.xlu1 %485 }
  0xb9   : > { %v487_v3 = vrot.slane %v486_v1, 4 }
  0xbb   : > { %v488_v6 = vadd.f32 %v487_v3, %v486_v1 }
  0xbd   : > { %v489_v9 = vrot.slane %v488_v6, 2 }
  0xbf   : > { %v490_v15 = vadd.f32 %v489_v9, %v488_v6 }
  0xc1   : > { %v491_v18 = vrot.slane %v490_v15, 1 }
  0xc3   : > { %v492_v21 = vadd.f32 %v491_v18, %v490_v15 }
  0xcc   : > { %v453_v2 = vpop.xlane.xlu0 %452 }
  0xcd   : > { %v454_v4 = vrot.slane %v453_v2, 4 }
  0xcf   : > { %v455_v5 = vadd.f32 %v454_v4, %v453_v2 }
  0xd1   : > { %v456_v7 = vrot.slane %v455_v5, 2 }
  0xd3   : > { %v457_v8 = vadd.f32 %v456_v7, %v455_v5 }
  0xd4   : > { %v469_v11 = vpop.xlane.xlu0 %468 }
  0xd5   : > { %v470_v12 = vrot.slane %v469_v11, 4  ;;  %v458_v14 = vrot.slane %v457_v8, 1 }
  0xd7   : > { %v471_v10 = vadd.f32 %v470_v12, %v469_v11  ;;  %v459_v13 = vadd.f32 %v458_v14, %v457_v8 }
  0xd9   : > { %v472_v16 = vrot.slane %v471_v10, 2  ;;  %822 = vpush %v459_v13 }
  0xdb   : > { %v473_v17 = vadd.f32 %v472_v16, %v471_v10 }
  0xdd   : > { %v474_v19 = vrot.slane %v473_v17, 1 }
  0xdf   : > { %v475_v20 = vadd.f32 %v474_v19, %v473_v17 }
  0xe1   : > { %824 = vpush %v475_v20 }
  0xe2   : > { %831 = vpush %v492_v21 }
 0x10a   : > { %s823_s11 = spop %822 }
 0x10b   : > { %s461_s9 = sadd.f32 %s823_s11, %s445_s27 }
 0x10d   : > { %463 = sst [smem:[#allocation9]] %s461_s9 }
 0x112   : > { %s825_s23 = spop %824 }
 0x113   : > { %p826_p1 = scmp.lt.s32.totalorder %s825_s23, 0  ;;  %s827_s21 = sceil.f32 %s825_s23 }
 0x114   : > { %s828_s20 = sfloor.f32 %s825_s23  ;;  %s832_s24 = spop %831 }
 0x115   : > { %s1506_s21 = smov (!%p826_p1, %s827_s21), %s828_s20  ;;  %p833_p2 = scmp.lt.s32.totalorder %s832_s24, 0 }
 0x116   : > { %s834_s16 = sceil.f32 %s832_s24  ;;  %s830_s1 = scvt.f32.s32 %s1506_s21 }
 0x117   : > { %s835_s26 = sfloor.f32 %s832_s24 }
 0x118   : > { %s1508_s16 = smov (!%p833_p2, %s834_s16), %s835_s26  ;;  %s478_s8 = sadd.s32 %s830_s1, %s464_s22 }
 0x119   : > { %480 = sst [smem:[#allocation10]] %s478_s8  ;;  %s837_s12 = scvt.f32.s32 %s1508_s16 }
 0x11b   : > { %s495_s13 = sadd.s32 %s837_s12, %s481_s10 }
 0x11c   : > { %497 = sst [smem:[#allocation12]] %s495_s13 }
 0x11d LB: >> { %v524_v22 = vstv %s1222_s14  ;;  %v1229_v23 = vmov 0.0   ;;  %s531_s15 = sld [smem:[#allocation13 + %s1222_s14]]  ;;  %s545_s27 = scalar_lea.smem [#allocation13], %s1222_s14  ;;  %s1222_s14 = sphi %s1397_s14, %s523_s14  }
 0x11e   : >> { %vm525_vm3 = vcmp.eq.s32.totalorder %v1393_v63, %v524_v22  ;;  %vm526_vm4 = vcmp.eq.s32.totalorder %v1395_v0, %v524_v22  ;;  %s547_s19 = sld [smem:[#allocation14 + %s1222_s14]]  ;;  %s563_s22 = scalar_lea.smem [#allocation14], %s1222_s14 }
 0x11f   : >> { %v804_v24 = vsel %vm525_vm3, 1.0, %v1229_v23  ;;  %v805_v25 = vsel %vm526_vm4, 1.0, %v1229_v23  ;;  %s523_s14 = sadd.s32 1, %s1222_s14  }
 0x120   : >> { %v532_v26 = vsel %vm448_vm0, %v804_v24, 0.0  ;;  %v533_v27 = vsel %vm448_vm0, %v805_v25, 0.0  ;;  %v548_v28 = vmul.f32 %v804_v24, %v1383_v38  ;;  %v549_v29 = vmul.f32 %v805_v25, %v1385_v39  ;;  %p520_p3 = scmp.ge.s32.totalorder %s523_s14, 64  }
 0x121   : >> { %v534_v30 = vadd.f32 %v533_v27, %v532_v26  ;;  %p883_p4 = scmp.eq.s32.totalorder (%p520_p3), %s1304_s30, 1  ;;  %s581_s21 = sshll.u32 (%p520_p3), %s1482_s4, 4  ;;  %s582_s21 = int_to_ptr.hbm [resolvable:$true] %s581_s21 }
 0x122   : >> { %v550_v31 = vsel %vm448_vm0, %v548_v28, 0.0  ;;  %v551_v32 = vsel %vm448_vm0, %v549_v29, 0.0  ;;  %s1230_s20 = smov (%p520_p3), [#allocation10]   ;;  %s571_s1 = sshll.u32 (%p520_p3), %s1481_s3, 4  ;;  %s572_s1 = int_to_ptr.hbm [resolvable:$true] %s571_s1 }
 0x123   : >> { %535 = vadd.xlane.f32.xlu0 %v534_v30  ;;  %v552_v33 = vadd.f32 %v551_v32, %v550_v31  ;;  %s1231_s26 = smov (%p520_p3), [#allocation9]   ;;  %s591_s13 = sshll.u32 (%p520_p3), %s1483_s5, 4  ;;  %s592_s13 = int_to_ptr.hbm [resolvable:$true] %s591_s13 }
 0x12b   : >> { %553 = vadd.xlane.f32.xlu0 %v552_v33 }
 0x196   : >> { %v536_v34 = vpop.xlane.xlu0 %535 }
 0x197   : >> { %v537_v35 = vrot.slane %v536_v34, 4 }
 0x199   : >> { %v538_v36 = vadd.f32 %v537_v35, %v536_v34 }
 0x19b   : >> { %v539_v37 = vrot.slane %v538_v36, 2 }
 0x19d   : >> { %v540_v40 = vadd.f32 %v539_v37, %v538_v36 }
 0x19e   : >> { %v554_v41 = vpop.xlane.xlu0 %553 }
 0x19f   : >> { %v555_v42 = vrot.slane %v554_v41, 4  ;;  %v541_v43 = vrot.slane %v540_v40, 1 }
 0x1a1   : >> { %v556_v44 = vadd.f32 %v555_v42, %v554_v41  ;;  %v542_v45 = vadd.f32 %v541_v43, %v540_v40 }
 0x1a3   : >> { %v557_v46 = vrot.slane %v556_v44, 2  ;;  %842 = vpush %v542_v45 }
 0x1a5   : >> { %v558_v47 = vadd.f32 %v557_v46, %v556_v44 }
 0x1a7   : >> { %v559_v48 = vrot.slane %v558_v47, 1 }
 0x1a9   : >> { %v560_v49 = vadd.f32 %v559_v48, %v558_v47 }
 0x1ab   : >> { %844 = vpush %v560_v49 }
 0x1d4   : >> { %s843_s18 = spop %842 }
 0x1d5   : >> { %s544_s17 = sadd.f32 %s843_s18, %s531_s15  ;;  %s601_s18 = sshll.u32 (%p520_p3), %s1484_s6, 4  ;;  %s602_s18 = int_to_ptr.vmem [resolvable:$true] %s601_s18 }
 0x1d7   : >> { %546 = sst [smem:[%s545_s27]] %s544_s17  ;;  %s1233_s17 = smov (%p520_p3), [#allocation13]  }
 0x1db   : > { %522 = sbr.rel (!%p520_p3) target bundleno = 285 (0x11d), region = 165 }
 0x1dc   : >> { %s845_s11 = spop %844 }
 0x1dd   : >> { %s562_s9 = sadd.f32 %s845_s11, %s547_s19  ;;  %s1232_s19 = smov (%p520_p3), [#allocation12]  }
 0x1df   : >> { %564 = sst [smem:[%s563_s22]] %s562_s9  ;;  %s611_s9 = sshll.u32 (%p520_p3), %s1485_s7, 4  ;;  %s612_s9 = int_to_ptr.vmem [resolvable:$true] %s611_s9 }
 0x1e0   : > { %855 = dma.smem_to_hbm (%p883_p4), %s1230_s20, 16, %s582_s21, [#allocation11]  }
 0x1e1   : > { %853 = dma.smem_to_hbm (%p883_p4), %s1231_s26, 16, %s572_s1, [#allocation4]  }
 0x1e2   : > { %857 = dma.smem_to_hbm (%p883_p4), %s1232_s19, 16, %s592_s13, [#allocation11]  }
 0x1e3   : > { %859 = dma.smem_to_vmem (%p883_p4), %s1233_s17, 16, %s602_s18, [#allocation5]  }
 0x1e4   : > { %s1234_s22 = smov [#allocation14]  }
 0x1e5   : > { %861 = dma.smem_to_vmem (%p883_p4), %s1234_s22, 16, %s612_s9, [#allocation15]  }
 0x1e6   : > { %1177 = dma.done.wait (%p883_p4), [#allocation4], 16  }
 0x1e7   : > { %1179 = vsyncadd (%p883_p4), [#allocation4], 4294967280 }
 0x1e8   : > { %1181 = dma.done.wait (%p883_p4), [#allocation11], 32  }
 0x1e9   : > { %1183 = vsyncadd (%p883_p4), [#allocation11], 4294967264 }
 0x1ea   : > { %1185 = dma.done.wait (%p883_p4), [#allocation5], 16  }
 0x1eb   : > { %1187 = vsyncadd (%p883_p4), [#allocation5], 4294967280 }
 0x1ec   : > { %1189 = dma.done.wait (%p883_p4), [#allocation15], 16  }
 0x1ed   : > { %1191 = vsyncadd (%p883_p4), [#allocation15], 4294967280 }
 0x1ee   : > { %640 = sfence }
 0x1ef PF: > { %s28_s29 = sadd.s32 1, %s1214_s29   ;;  %s1496_s23 = sld [smem:[#allocation22_spill]] }
 0x1f0   : > { %p25_p5 = scmp.ge.s32.totalorder %s28_s29, 4   ;;  %s1497_s26 = sld [smem:[#allocation24_spill]] }
 0x1f1   : > { %s1498_s10 = sld [smem:[#allocation23_spill]]  ;;  %s1499_s24 = smov %s1198_s25 }
 0x1f2   : > { %s1501_s27 = smov %s1210_s28 }
 0x1f3   :  { %27 = sbr.rel (!%p25_p5) target bundleno = 12 (0xc), region = 176 }
 0x1f5   : > { %s1500_s25 = smov %s1496_s23 }
 0x1f7   : > { %s1502_s28 = smov %s1498_s10 }
 0x1f8   :  { %646 = vsyncpa [#allocation3], 1 }
 0x1f9   :  { %648 = vsyncpa [#allocation3 + $0x1], 1 }
 0x1fa   :  { %649 = vsyncpa [#allocation7], 1 }
 0x1fb   :  { %651 = vsyncpa [#allocation7 + $0x1], 1 }
 0x1fc   :  { %652 = vsyncpa [#allocation4], 1 }
 0x1fd   :  { %654 = vsyncpa [#allocation4 + $0x1], 1 }
 0x1fe   :  { %655 = vsyncpa [#allocation11], 1 }
 0x1ff   :  { %656 = vsyncpa [#allocation5], 1 }
 0x200   :  { %658 = vsyncpa [#allocation5 + $0x1], 1 }
 0x201   :  { %659 = vsyncpa [#allocation15], 1 }

// kernel: seg_e2ec_forward.2
= control target key start
LH: loop header
LB: loop body
LE: loop exit
PB: predicated region body
PF: predicated region fallthrough
CT: control target
= control target key end

     0   :  { %s126_s0 = inlined_call_operand.vmem [shape: f32[2,16], index: 0, kind: input, shape index: {}]   ;;  %s127_s1 = inlined_call_operand.vmem [shape: f32[2,16], index: 1, kind: input, shape index: {}]   ;;  %s128_s2 = inlined_call_operand.vmem [shape: f32[2,16], index: 2, kind: input, shape index: {}]   ;;  %s129_s3 = inlined_call_operand.vmem [shape: f32[2], index: 3, kind: output, shape index: {}]  }
   0x1   :  { %v15_v0 = vld [vmem:[%s128_s2] sm:$0x3] }
   0x2   :  { %v16_v1 = vld [vmem:[%s126_s0] sm:$0x3] }
   0x3   :  { %v17_v2 = vsub.f32 %v16_v1, %v15_v0  ;;  %v18_v3 = vld [vmem:[%s127_s1] sm:$0x3] }
   0x4   :  { %8 = vsyncpa [#allocation3], 0  ;;  %v19_v4 = vsub.f32 %v18_v3, %v15_v0  ;;  %vm32_vm1 = vcmask 123904   ;;  %s62_s18 = sshll.u32 %s129_s3, 4  ;;  %s93_s20 = smov [#allocation2]   ;;  %s63_s18 = int_to_ptr.vmem [resolvable:$true] %s62_s18 }
   0x5   :  { %v20_v5 = vand.u32 2147483647, %v17_v2  ;;  %v23_v6 = vmul.f32 0.5, %v17_v2 }
   0x6   :  { %v21_v7 = vand.u32 2147483647, %v19_v4  ;;  %v28_v8 = vmul.f32 0.5, %v19_v4 }
   0x7   :  { %vm22_vm0 = vcmp.lt.f32.partialorder %v20_v5, 1.0  ;;  %v24_v9 = vmul.f32 %v23_v6, %v17_v2  ;;  %v72_v10 = vadd.f32 -0.5, %v20_v5 }
   0x8   :  { %v29_v12 = vmul.f32 %v28_v8, %v19_v4  ;;  %v73_v13 = vadd.f32 -0.5, %v21_v7  ;;  %vm27_vm2 = vcmp.lt.f32.partialorder %v21_v7, 1.0 }
   0x9   :  { %v26_v11 = vsel %vm22_vm0, %v24_v9, %v72_v10 }
   0xa   :  { %v33_v14 = vsel %vm32_vm1, %v26_v11, 0.0  ;;  %v31_v15 = vsel %vm27_vm2, %v29_v12, %v73_v13 }
   0xb   :  { %34 = vadd.xlane.f32.xlu0 %v33_v14  ;;  %v45_v16 = vsel %vm32_vm1, %v31_v15, 0.0 }
  0x13   :  { %46 = vadd.xlane.f32.xlu0 %v45_v16 }
  0x7e   :  { %v35_v17 = vpop.xlane.xlu0 %34 }
  0x7f   :  { %v36_v18 = vrot.slane %v35_v17, 4 }
  0x81   :  { %v37_v19 = vadd.f32 %v36_v18, %v35_v17 }
  0x83   :  { %v38_v20 = vrot.slane %v37_v19, 2 }
  0x85   :  { %v39_v21 = vadd.f32 %v38_v20, %v37_v19 }
  0x86   :  { %v47_v22 = vpop.xlane.xlu0 %46 }
  0x87   :  { %v48_v23 = vrot.slane %v47_v22, 4  ;;  %v40_v24 = vrot.slane %v39_v21, 1 }
  0x89   :  { %v49_v25 = vadd.f32 %v48_v23, %v47_v22  ;;  %v41_v26 = vadd.f32 %v40_v24, %v39_v21 }
  0x8b   :  { %v50_v27 = vrot.slane %v49_v25, 2  ;;  %74 = vpush %v41_v26 }
  0x8d   :  { %v51_v28 = vadd.f32 %v50_v27, %v49_v25 }
  0x8f   :  { %v52_v29 = vrot.slane %v51_v28, 1 }
  0x91   :  { %v53_v30 = vadd.f32 %v52_v29, %v51_v28 }
  0x93   :  { %76 = vpush %v53_v30 }
  0xbc   :  { %s75_s0 = spop %74 }
  0xbd   :  { %44 = sst [smem:[#allocation2]] %s75_s0 }
  0xc4   :  { %s77_s19 = spop %76 }
  0xc5   :  { %56 = sst [smem:[#allocation2 + $0x1]] %s77_s19 }
  0xc6   :  { %65 = dma.smem_to_vmem %s93_s20, 16, %s63_s18, [#allocation3]  }
  0xc7   :  { %91 = dma.done.wait [#allocation3], 16  }
  0xc8   :  { %92 = vsyncadd [#allocation3], 4294967280 }
  0xc9   :  { %70 = sfence }
  0xca   :  { %71 = vsyncpa [#allocation3], 1 }

</bundles_post_ra>
